<compile_context>
chip_gen: v6e
topology: v6e:2x2x1
jax: 0.10.0
libtpu: 0.0.40
codegen_flags: <defaults>
</compile_context>

<pallas_src>
import jax
import jax.numpy as jnp
from jax import lax
from jax.experimental import pallas as pl
from jax.experimental.pallas import tpu as pltpu

EPS = 1e-5


def _round_up(n, m):
    return ((n + m - 1) // m) * m


def _mlp_kernel(x_ref, w1_ref, w2_ref, vecs_ref, o_ref):
    # vecs_ref rows: 0=b1, 1=b2' (BN1 folded), 2=w3' row (BN2 folded), 3=[b3', 0, ...]
    x = x_ref[...]                                   # (TB, 12)
    b1 = vecs_ref[0:1, :]                            # (1, 64)
    b2 = vecs_ref[1:2, :]                            # (1, 64)
    w3r = vecs_ref[2:3, :]                           # (1, 64)
    b3 = vecs_ref[3:4, 0:1]                          # (1, 1)

    # layer_1 + ReLU
    h = jnp.dot(x, w1_ref[...], preferred_element_type=jnp.float32) + b1
    h = jnp.maximum(h, 0.0)

    # layer_2 (with BN1 folded into W2/b2) + ReLU
    h = jnp.dot(h, w2_ref[...], preferred_element_type=jnp.float32) + b2
    h = jnp.maximum(h, 0.0)

    # dropout(p=0.1): identity in eval mode
    # layer_out (with BN2 folded into W3/b3); N=1 -> VPU multiply + lane reduce
    o_ref[...] = jnp.sum(h * w3r, axis=-1, keepdims=True) + b3


def binary_classification_forward(x, params, *, tb=1024):
    """x: (B, 12) float32; params: dict of weights. Returns (B, 1) float32."""
    B = x.shape[0]

    # --- Fold eval-mode BatchNorms into the following Linear (wrapper-side, constants) ---
    s1 = lax.rsqrt(params["v1"] + EPS)
    a1 = params["g1"] * s1                               # (1, 64)
    c1 = params["be1"] - params["m1"] * a1               # (1, 64)
    w2f = a1.reshape(64, 1) * params["w2"]               # (64, 64)
    b2f = params["b2"] + c1 @ params["w2"]               # (1, 64)

    s2 = lax.rsqrt(params["v2"] + EPS)
    a2 = params["g2"] * s2                               # (1, 64)
    c2 = params["be2"] - params["m2"] * a2               # (1, 64)
    w3f = a2.reshape(64, 1) * params["w3"]               # (64, 1)
    b3f = params["b3"] + c2 @ params["w3"]               # (1, 1)

    # Pack small vectors into a single (4, 64) input.
    w3row = w3f.reshape(1, 64)
    b3row = jnp.zeros((1, 64), jnp.float32).at[0, 0].set(b3f[0, 0])
    vecs = jnp.concatenate([params["b1"], b2f, w3row, b3row], axis=0)   # (4, 64)

    # --- Batch tiling ---
    TB = min(tb, _round_up(B, 8))
    num_tiles = pl.cdiv(B, TB)
    B_pad = num_tiles * TB
    x_p = x if B_pad == B else jnp.pad(x, ((0, B_pad - B), (0, 0)))

    out = pl.pallas_call(
        _mlp_kernel,
        grid=(num_tiles,),
        in_specs=[
            pl.BlockSpec((TB, 12), lambda i: (i, 0)),    # x tile (pipelined)
            pl.BlockSpec((12, 64), lambda i: (0, 0)),    # w1 (resident)
            pl.BlockSpec((64, 64), lambda i: (0, 0)),    # w2' (resident)
            pl.BlockSpec((4, 64), lambda i: (0, 0)),     # packed biases / w3' row (resident)
        ],
        out_specs=pl.BlockSpec((TB, 1), lambda i: (i, 0)),
        out_shape=jax.ShapeDtypeStruct((B_pad, 1), jnp.float32),
        compiler_params=pltpu.CompilerParams(
            dimension_semantics=("parallel",)),
    )(x_p, params["w1"], w2f, vecs)

    return out[:B]


def init_params(key):
    """Deterministic parameter init matching the PyTorch module's shapes."""
    ks = jax.random.split(key, 10)

    def linear(kw, kb, fan_in, fan_out):
        # PyTorch Linear default init: U(-1/sqrt(fan_in), 1/sqrt(fan_in))
        bound = 1.0 / jnp.sqrt(fan_in)
        w = jax.random.uniform(kw, (fan_in, fan_out), jnp.float32, -bound, bound)
        b = jax.random.uniform(kb, (1, fan_out), jnp.float32, -bound, bound)
        return w, b

    w1, b1 = linear(ks[0], ks[1], 12, 64)
    w2, b2 = linear(ks[2], ks[3], 64, 64)
    w3, b3 = linear(ks[4], ks[5], 64, 1)

    # BatchNorm1d: gamma=1, beta=0; running stats perturbed so normalization is non-trivial.
    g1 = jnp.ones((1, 64), jnp.float32)
    be1 = jnp.zeros((1, 64), jnp.float32)
    m1 = 0.1 * jax.random.normal(ks[6], (1, 64), jnp.float32)
    v1 = 1.0 + 0.05 * jnp.abs(jax.random.normal(ks[7], (1, 64), jnp.float32))

    g2 = jnp.ones((1, 64), jnp.float32)
    be2 = jnp.zeros((1, 64), jnp.float32)
    m2 = 0.1 * jax.random.normal(ks[8], (1, 64), jnp.float32)
    v2 = 1.0 + 0.05 * jnp.abs(jax.random.normal(ks[9], (1, 64), jnp.float32))

    return dict(w1=w1, b1=b1, g1=g1, be1=be1, m1=m1, v1=v1,
                w2=w2, b2=b2, g2=g2, be2=be2, m2=m2, v2=v2,
                w3=w3, b3=b3)


def reference_forward(x, p):
    h = jnp.maximum(x @ p["w1"] + p["b1"], 0.0)
    h = (h - p["m1"]) / jnp.sqrt(p["v1"] + EPS) * p["g1"] + p["be1"]
    h = jnp.maximum(h @ p["w2"] + p["b2"], 0.0)
    h = (h - p["m2"]) / jnp.sqrt(p["v2"] + EPS) * p["g2"] + p["be2"]
    return h @ p["w3"] + p["b3"]


if __name__ == "__main__":
    key = jax.random.PRNGKey(0)
    kx, kx2, kp = jax.random.split(key, 3)
    params = init_params(kp)

    # Small primary test: B=8 (single tile).
    B = 8
    x = jax.random.normal(kx, (B, 12), jnp.float32)
    out = jax.block_until_ready(binary_classification_forward(x, params))
    ref = reference_forward(x, params)
    assert out.shape == (B, 1)
    assert jnp.allclose(out, ref, atol=1e-4, rtol=1e-4)

    # Multi-tile + padding path: B=200 with TB=64 (grid=(4,), 56 padded rows sliced off).
    B2 = 200
    x2 = jax.random.normal(kx2, (B2, 12), jnp.float32)
    out2 = jax.block_until_ready(binary_classification_forward(x2, params, tb=64))
    ref2 = reference_forward(x2, params)
    assert out2.shape == (B2, 1)
    assert jnp.allclose(out2, ref2, atol=1e-4, rtol=1e-4)

    print("KERNEL_OK")
</pallas_src>

<mosaic_0001>
module attributes {stable_mosaic.version = 11 : i64} {
  func.func @_mlp_kernel(%arg0: i32, %arg1: memref<8x12xf32, #tpu.memory_space<vmem>>, %arg2: memref<12x64xf32, #tpu.memory_space<vmem>>, %arg3: memref<64x64xf32, #tpu.memory_space<vmem>>, %arg4: memref<4x64xf32, #tpu.memory_space<vmem>>, %arg5: memref<8x1xf32, #tpu.memory_space<vmem>>) attributes {dimension_semantics = [#tpu.dimension_semantics<parallel>], iteration_bounds = array<i64: 1>, scalar_prefetch = 0 : i64, scratch_operands = 0 : i64, tpu.core_type = #tpu.core_type<tc>, window_params = [{transform_indices = @transform_0, window_bounds = array<i64: 8, 12>}, {pipeline_mode = #tpu.pipeline_mode<synchronous>, transform_indices = @transform_1, window_bounds = array<i64: 12, 64>}, {pipeline_mode = #tpu.pipeline_mode<synchronous>, transform_indices = @transform_2, window_bounds = array<i64: 64, 64>}, {pipeline_mode = #tpu.pipeline_mode<synchronous>, transform_indices = @transform_3, window_bounds = array<i64: 4, 64>}, {transform_indices = @transform_4, window_bounds = array<i64: 8, 1>}]} {
    %c0 = arith.constant 0 : index
    %c0_0 = arith.constant 0 : index
    %0 = vector.load %arg1[%c0, %c0_0] : memref<8x12xf32, #tpu.memory_space<vmem>>, vector<8x12xf32>
    %c0_1 = arith.constant 0 : index
    %c0_2 = arith.constant 0 : index
    %1 = vector.load %arg4[%c0_1, %c0_2] : memref<4x64xf32, #tpu.memory_space<vmem>>, vector<1x64xf32>
    %c1 = arith.constant 1 : index
    %c0_3 = arith.constant 0 : index
    %2 = vector.load %arg4[%c1, %c0_3] : memref<4x64xf32, #tpu.memory_space<vmem>>, vector<1x64xf32>
    %c2 = arith.constant 2 : index
    %c0_4 = arith.constant 0 : index
    %3 = vector.load %arg4[%c2, %c0_4] : memref<4x64xf32, #tpu.memory_space<vmem>>, vector<1x64xf32>
    %c3 = arith.constant 3 : index
    %c0_5 = arith.constant 0 : index
    %4 = vector.load %arg4[%c3, %c0_5] : memref<4x64xf32, #tpu.memory_space<vmem>>, vector<1x1xf32>
    %c0_6 = arith.constant 0 : index
    %c0_7 = arith.constant 0 : index
    %5 = vector.load %arg2[%c0_6, %c0_7] : memref<12x64xf32, #tpu.memory_space<vmem>>, vector<12x64xf32>
    %cst = arith.constant dense<0.000000e+00> : vector<8x64xf32>
    %6 = tpu.matmul %0, %5, %cst {dimension_numbers = #tpu.dot_dimension_numbers<[1], [0], [0], [1], [0, 0, 1, 1], [], []>} : vector<8x12xf32>, vector<12x64xf32>, vector<8x64xf32> -> vector<8x64xf32>
    %7 = vector.broadcast %1 : vector<1x64xf32> to vector<8x64xf32>
    %8 = arith.addf %6, %7 : vector<8x64xf32>
    %cst_8 = arith.constant 0.000000e+00 : f32
    %9 = vector.broadcast %cst_8 : f32 to vector<8x64xf32>
    %10 = arith.maximumf %8, %9 : vector<8x64xf32>
    %c0_9 = arith.constant 0 : index
    %c0_10 = arith.constant 0 : index
    %11 = vector.load %arg3[%c0_9, %c0_10] : memref<64x64xf32, #tpu.memory_space<vmem>>, vector<64x64xf32>
    %cst_11 = arith.constant dense<0.000000e+00> : vector<8x64xf32>
    %12 = tpu.matmul %10, %11, %cst_11 {dimension_numbers = #tpu.dot_dimension_numbers<[1], [0], [0], [1], [0, 0, 1, 1], [], []>} : vector<8x64xf32>, vector<64x64xf32>, vector<8x64xf32> -> vector<8x64xf32>
    %13 = vector.broadcast %2 : vector<1x64xf32> to vector<8x64xf32>
    %14 = arith.addf %12, %13 : vector<8x64xf32>
    %cst_12 = arith.constant 0.000000e+00 : f32
    %15 = vector.broadcast %cst_12 : f32 to vector<8x64xf32>
    %16 = arith.maximumf %14, %15 : vector<8x64xf32>
    %17 = vector.broadcast %3 : vector<1x64xf32> to vector<8x64xf32>
    %18 = arith.mulf %16, %17 : vector<8x64xf32>
    %cst_13 = arith.constant dense<0.000000e+00> : vector<8xf32>
    %19 = vector.multi_reduction <add>, %18, %cst_13 [1] : vector<8x64xf32> to vector<8xf32>
    %20 = vector.shape_cast %19 : vector<8xf32> to vector<8x1xf32>
    %21 = vector.broadcast %4 : vector<1x1xf32> to vector<8x1xf32>
    %22 = arith.addf %20, %21 : vector<8x1xf32>
    %c0_14 = arith.constant 0 : index
    %c0_15 = arith.constant 0 : index
    %23 = vector.load %arg5[%c0_14, %c0_15] : memref<8x1xf32, #tpu.memory_space<vmem>>, vector<8x1xf32>
    tpu.vector_store %arg5[%c0_14, %c0_15], %22 {strides = array<i32>} : memref<8x1xf32, #tpu.memory_space<vmem>>, vector<8x1xf32>,
    return
  }
  func.func @transform_0(%arg0: i32) -> (i32, i32) {
    %c0_i32 = arith.constant 0 : i32
    %c0_i32_0 = arith.constant 0 : i32
    return %arg0, %c0_i32 : i32, i32
  }
  func.func @transform_1(%arg0: i32) -> (i32, i32) {
    %c0_i32 = arith.constant 0 : i32
    %c0_i32_0 = arith.constant 0 : i32
    %c0_i32_1 = arith.constant 0 : i32
    return %c0_i32, %c0_i32_0 : i32, i32
  }
  func.func @transform_2(%arg0: i32) -> (i32, i32) {
    %c0_i32 = arith.constant 0 : i32
    %c0_i32_0 = arith.constant 0 : i32
    %c0_i32_1 = arith.constant 0 : i32
    return %c0_i32, %c0_i32_0 : i32, i32
  }
  func.func @transform_3(%arg0: i32) -> (i32, i32) {
    %c0_i32 = arith.constant 0 : i32
    %c0_i32_0 = arith.constant 0 : i32
    %c0_i32_1 = arith.constant 0 : i32
    return %c0_i32, %c0_i32_0 : i32, i32
  }
  func.func @transform_4(%arg0: i32) -> (i32, i32) {
    %c0_i32 = arith.constant 0 : i32
    %c0_i32_0 = arith.constant 0 : i32
    return %arg0, %c0_i32 : i32, i32
  }
}

</mosaic_0001>

<bundles_post_ra>
// kernel: tpu_custom_call.1
= control target key start
LH: loop header
LB: loop body
LE: loop exit
PB: predicated region body
PF: predicated region fallthrough
CT: control target
= control target key end

     0   :  { %9 = vsyncpa [#allocation3], 0  ;;  %s426_s0 = inlined_call_operand.hbm [shape: f32[8,12], index: 0, kind: input, shape index: {}]   ;;  %s427_s1 = inlined_call_operand.hbm [shape: f32[12,64], index: 1, kind: input, shape index: {}]   ;;  %s428_s2 = inlined_call_operand.hbm [shape: f32[64,64], index: 2, kind: input, shape index: {}]   ;;  %s429_s3 = inlined_call_operand.vmem [shape: f32[4,64], index: 3, kind: input, shape index: {}]   ;;  %s430_s4 = inlined_call_operand.vmem [shape: f32[8,1], index: 4, kind: output, shape index: {}]  }
   0x1   :  { %10 = vsyncpa [#allocation5], 0  ;;  %s370_s15 = smov [#allocation4]  }
   0x2   :  { %s26_s16 = sshll.u32 %s370_s15, 4  ;;  %s27_s16 = int_to_ptr.vmem [resolvable:$true] %s26_s16 }
   0x3   :  { %s314_s17 = scalar_lea.vmem %s27_s16, 256  ;;  %p319_p1 = scmp.lt.s32.totalorder %s27_s16, %s27_s16 }
   0x4   :  { %p315_p0 = scmp.ne.s32.totalorder %s27_s16, %s314_s17  ;;  %p320_p2 = scmp.lt.s32.totalorder %s314_s17, %s314_s17 }
   0x6   :  { %p321_p3 = por %p320_p2, %p319_p1 }
   0x8   :  { %p322_p4 = pnand %p321_p3, %p315_p0 }
   0xa   :  { %325 = shalt.err (!%p322_p4)
}
   0xb   :  { %s371_s18 = smov 128   ;;  %s372_s19 = smov 8  }
   0xc   :  { %32 = dma.hbm_to_vmem [thread:$0]  %s427_s1, 256, %s27_s16, [#allocation5], %s371_s18, %s371_s18, %s372_s19  }
   0xd   :  { %s373_s22 = smov [#allocation2]   ;;  %s374_s24 = smov [#allocation6]  }
   0xe   :  { %s17_s23 = sshll.u32 %s373_s22, 4  ;;  %s38_s25 = sshll.u32 %s374_s24, 4  ;;  %s18_s23 = int_to_ptr.vmem [resolvable:$true] %s17_s23  ;;  %s39_s25 = int_to_ptr.vmem [resolvable:$true] %s38_s25 }
   0xf   :  { %s334_s26 = scalar_lea.vmem %s18_s23, 128  ;;  %p339_p6 = scmp.lt.s32.totalorder %s18_s23, %s18_s23 }
  0x10   :  { %p335_p5 = scmp.ne.s32.totalorder %s18_s23, %s334_s26  ;;  %p340_p7 = scmp.lt.s32.totalorder %s334_s26, %s334_s26 }
  0x12   :  { %p341_p8 = por %p340_p7, %p339_p6 }
  0x14   :  { %p342_p9 = pnand %p341_p8, %p335_p5 }
  0x16   :  { %345 = shalt.err (!%p342_p9)
}
  0x17   :  { %20 = dma.hbm_to_vmem [thread:$0]  %s426_s0, 128, %s18_s23, [#allocation3]  }
  0x18   :  { %s354_s29 = scalar_lea.vmem %s39_s25, 1024  ;;  %p359_p11 = scmp.lt.s32.totalorder %s39_s25, %s39_s25 }
  0x19   :  { %p355_p10 = scmp.ne.s32.totalorder %s39_s25, %s354_s29  ;;  %p360_p12 = scmp.lt.s32.totalorder %s354_s29, %s354_s29 }
  0x1b   :  { %p361_p13 = por %p360_p12, %p359_p11 }
  0x1d   :  { %p362_p0 = pnand %p361_p13, %p355_p10 }
  0x1f   :  { %365 = shalt.err (!%p362_p0)
}
  0x20   :  { %44 = dma.hbm_to_vmem [thread:$0]  %s428_s2, 1024, %s39_s25, [#allocation5], %s371_s18, %s371_s18, %s372_s19  }
  0x21   :  { %366 = dma.done.wait [#allocation3], 128  }
  0x22   :  { %367 = vsyncadd [#allocation3], 4294967168 }
  0x23   :  { %368 = dma.done.wait [#allocation5], 1280  }
  0x24   :  { %369 = vsyncadd [#allocation5], 4294966016  ;;  %v375_v0 = vmov 0.0   ;;  %vm376_vm0 = vmmov 0   ;;  %vm71_vm1 = vcmask 1043456   ;;  %v61_v2 = vld [vmem:[#allocation4] sm:$0xff] }
  0x25   :  { %273 = vmatprep.subr.mxu0 %v375_v0  ;;  %277 = vmatprep.mubr.msk.f32.mxu0 %vm376_vm0, %v375_v0  ;;  %v62_v1 = vld [vmem:[#allocation4 + $0x8] sm:$0xf]  ;;  %v56_v3 = vld [vmem:[#allocation2] sm:$0xff]  ;;  %vm67_vm2 = vcmask 97280   ;;  %v152_v5 = vld [vmem:[#allocation6 + $0x30] sm:$0xff]  ;;  %vm158_vm3 = vcmask 523264  }
  0x26   :  { %280 = vmatprep.subr.mxu1 %v375_v0  ;;  %296 = vmatprep.mubr.msk.f32.mxu1 %vm376_vm0, %v375_v0  ;;  %v153_v4 = vld [vmem:[#allocation6 + $0x38] sm:$0xff]  ;;  %v151_v6 = vld [vmem:[#allocation6 + $0x28] sm:$0xff]  ;;  %v150_v7 = vld [vmem:[#allocation6 + $0x20] sm:$0xff]  ;;  %vm246_vm4 = vcmask 7168  }
  0x27   :  { %274 = vmatpush3.msk.msra.mxu0 %vm71_vm1, %v62_v1  ;;  %281 = vmatpush3.msra.mxu1 %v153_v4  ;;  %v149_v8 = vld [vmem:[#allocation6 + $0x18] sm:$0xff]  ;;  %v148_v9 = vld [vmem:[#allocation6 + $0x10] sm:$0xff]  ;;  %v147_v10 = vld [vmem:[#allocation6 + $0x8] sm:$0xff] }
  0x28   :  { %275 = vmatprep.subr.mxu0 %v375_v0  ;;  %282 = vmatprep.subr.mxu1 %v375_v0  ;;  %v146_v11 = vld [vmem:[#allocation6] sm:$0xff]  ;;  %v254_v12 = vld [vmem:[%s429_s3] ss:$0 sm:$0xff]  ;;  %v257_v17 = vld [vmem:[%s429_s3 + $0x1] ss:$0 sm:$0xff] }
  0x29   :  { %276 = vmatpush3.msra.mxu0 %v61_v2  ;;  %283 = vmatpush3.msra.mxu1 %v152_v5  ;;  %v259_v21 = vld [vmem:[%s429_s3 + $0x2] ss:$0 sm:$0xff]  ;;  %v260_v25 = vld [vmem:[%s429_s3 + $0x3] ss:$0 sm:$0xff] }
  0x2a   :  { %278 = vmatmul.mubr.msk.f32.vlgmr.msra.gmra.mxu0 %vm67_vm2, %v56_v3  ;;  %284 = vmatprep.subr.mxu1 %v375_v0 }
  0x2b   :  { %285 = vmatpush3.msra.mxu1 %v151_v6 }
  0x2c   :  { %286 = vmatprep.subr.mxu1 %v375_v0 }
  0x2d   :  { %287 = vmatpush3.msra.mxu1 %v150_v7 }
  0x2e   :  { %288 = vmatprep.subr.mxu1 %v375_v0 }
  0x2f   :  { %289 = vmatpush3.msra.mxu1 %v149_v8 }
  0x30   :  { %290 = vmatprep.subr.mxu1 %v375_v0 }
  0x31   :  { %291 = vmatpush3.msra.mxu1 %v148_v9 }
  0x32   :  { %292 = vmatprep.subr.mxu1 %v375_v0 }
  0x33   :  { %293 = vmatpush3.msra.mxu1 %v147_v10 }
  0x34   :  { %294 = vmatprep.subr.mxu1 %v375_v0 }
  0x35   :  { %295 = vmatpush3.msra.mxu1 %v146_v11 }
  0xea   :  { %v141_v13 = vpop.f32.mrf.mxu0 }
  0xeb   :  { %v142_v14 = vadd.f32 %v254_v12, %v141_v13 }
  0xec   :  { %v279_v15 = vpop.f32.mrf.mxu0 }
  0xed   :  { %v145_v16 = vmax.f32 %v142_v14, 0.0 }
  0xef   :  { %297 = vmatmul.mubr.msk.f32.vlgmr.msra.gmra.mxu1 %vm158_vm3, %v145_v16 }
 0x1af   :  { %v228_v18 = vpop.f32.mrf.mxu1 }
 0x1b0   :  { %v229_v19 = vadd.f32 %v257_v17, %v228_v18 }
 0x1b1   :  { %v298_v20 = vpop.f32.mrf.mxu1 }
 0x1b2   :  { %v232_v22 = vmax.f32 %v229_v19, 0.0 }
 0x1b4   :  { %v237_v23 = vmul.f32 %v259_v21, %v232_v22 }
 0x1b6   :  { %v238_v24 = vsel %vm158_vm3, %v237_v23, 0.0 }
 0x1b7   :  { %239 = vadd.xlane.f32.xlu0 %v238_v24 }
 0x240   :  { %v240_v26 = vpop.xlane.xlu0 %239 }
 0x241   :  { %v245_v27 = vadd.f32 %v260_v25, %v240_v26 }
 0x243   :  { %247 = vst.msk [vmem:[%s430_s4] sm:$0xff] %vm246_vm4, %v245_v27 }
 0x244   :  { %252 = vsyncpa [#allocation3], 1 }
 0x245   :  { %253 = vsyncpa [#allocation5], 1 }

</bundles_post_ra>
